<compile_context>
chip_gen: v7x
topology: tpu7x:2x2x1
jax: 0.10.0
libtpu: 0.0.40
codegen_flags: <defaults>
</compile_context>

<pallas_src>
import jax
import jax.numpy as jnp
from jax.experimental import pallas as pl
from jax.experimental.pallas import tpu as pltpu


NEG_BIG = -1e30  # bias for padded action lanes: exp(NEG_BIG - max) == 0 exactly


def actor_kernel(x_ref, w1_ref, b1_ref, w2_ref, b2_ref, w3_ref, b3_ref, out_ref):
    # bf16 inputs for all three MXU matmuls; f32 accumulate + f32 VPU math.
    x = x_ref[...].astype(jnp.bfloat16)                                   # (TB, obs)

    h1 = jnp.dot(x, w1_ref[...], preferred_element_type=jnp.float32)
    h1 = jnp.maximum(h1 + b1_ref[...], 0.0)                               # (TB, 128) f32

    h2 = jnp.dot(h1.astype(jnp.bfloat16), w2_ref[...],
                 preferred_element_type=jnp.float32)
    h2 = jnp.maximum(h2 + b2_ref[...], 0.0)                               # (TB, 64) f32

    # action head padded to full 128 lanes (padded bias = -1e30 -> exp underflows
    # to 0), so the softmax max/exp/sum operate on a lane-dense vreg.
    logits = jnp.dot(h2.astype(jnp.bfloat16), w3_ref[...],
                     preferred_element_type=jnp.float32) + b3_ref[...]    # (TB, 128)

    m = jnp.max(logits, axis=-1, keepdims=True)
    e = jnp.exp(logits - m)
    denom = jnp.sum(e, axis=-1, keepdims=True)
    probs = e * pl.reciprocal(denom)          # exact: rows sum to 1 in f32
    out_ref[...] = probs[:, :out_ref.shape[-1]].astype(out_ref.dtype)


def prepare_actor_params(params, context):
    """One-time transform of module params into kernel operands.

    params = (w1, b1, w2, b2, w3, b3); weights stored (in_features, out_features)
    (torch Linear weight transposed), biases (1, out_features), all f32.
    context: (ctx_len,) fixed context vector of the module.
    """
    w1, b1, w2, b2, w3, b3 = params
    ctx = context.reshape(1, -1).astype(jnp.float32)
    ctx_len = ctx.shape[1]
    obs_dim = w1.shape[0] - ctx_len

    # concat(x, ctx) @ W1 + b1 == x @ W1[:obs] + (ctx @ W1[obs:] + b1)
    w1x = w1[:obs_dim]
    b1_eff = (ctx @ w1[obs_dim:].astype(jnp.float32) + b1).astype(jnp.float32)

    # pad the narrow action head to a multiple of 128 lanes
    action_dim = w3.shape[1]
    lane_n = max(128, ((action_dim + 127) // 128) * 128)
    pad = lane_n - action_dim
    w3p = jnp.pad(w3, ((0, 0), (0, pad)))
    b3p = jnp.concatenate(
        [b3.astype(jnp.float32), jnp.full((1, pad), NEG_BIG, jnp.float32)], axis=1)

    # NOTE: the three biases could be concatenated into a single operand and
    # sliced with static ref.at views in-kernel (minor per-operand latency win).
    kparams = (w1x.astype(jnp.bfloat16), b1_eff,
               w2.astype(jnp.bfloat16), b2.astype(jnp.float32),
               w3p.astype(jnp.bfloat16), b3p)
    return kparams, action_dim


def actor_forward(x, kernel_params, action_dim, *, tb=1024):
    """x: (B, obs_dim); kernel_params from prepare_actor_params."""
    x = x.astype(jnp.float32)
    batch, obs_dim = x.shape
    w1x, b1_eff, w2, b2, w3p, b3p = kernel_params

    if batch <= tb:
        tb_eff = batch                        # single grid step
    else:
        # at least 2 balanced steps so ("parallel",) shards across v7x's 2 TCs;
        # tiles stay a multiple of 8 sublanes.  (tb=1024 f32 tiles are far
        # below v5e's 16 MiB scoped-VMEM default, no vmem_limit needed.)
        half = -(-batch // 2)
        half = -(-half // 8) * 8
        tb_eff = min(tb, half)
    grid_n = pl.cdiv(batch, tb_eff)           # partial last block handled by Pallas

    resident = lambda arr: pl.BlockSpec(arr.shape, lambda i: (0, 0))

    return pl.pallas_call(
        actor_kernel,
        out_shape=jax.ShapeDtypeStruct((batch, action_dim), jnp.float32),
        grid=(grid_n,),
        in_specs=[
            pl.BlockSpec((tb_eff, obs_dim), lambda i: (i, 0)),   # x tiled over batch
            resident(w1x), resident(b1_eff),                     # weights stay resident
            resident(w2), resident(b2),
            resident(w3p), resident(b3p),
        ],
        out_specs=pl.BlockSpec((tb_eff, action_dim), lambda i: (i, 0)),
        compiler_params=pltpu.CompilerParams(
            dimension_semantics=("parallel",)),
    )(x, w1x, b1_eff, w2, b2, w3p, b3p)


def actor_forward_ref(x, context, params):
    """Pure-JAX f32 reference (mirrors the PyTorch module exactly)."""
    w1, b1, w2, b2, w3, b3 = params
    batch = x.shape[0]
    ctx = jnp.broadcast_to(context.reshape(1, -1), (batch, context.shape[0]))
    xc = jnp.concatenate([x.astype(jnp.float32), ctx.astype(jnp.float32)], axis=-1)
    h1 = jax.nn.relu(xc @ w1 + b1)
    h2 = jax.nn.relu(h1 @ w2 + b2)
    return jax.nn.softmax(h2 @ w3 + b3, axis=-1)


def init_actor_params(key, obs_dim, ctx_len, action_dim):
    """Deterministic synthetic init (uniform, PyTorch-Linear-like bounds)."""
    def linear(key, fan_in, fan_out):
        k_w, k_b = jax.random.split(key)
        bound = 1.0 / jnp.sqrt(float(fan_in))
        # stored as (in, out): torch's (out, in) weight, transposed
        w = jax.random.uniform(k_w, (fan_in, fan_out), jnp.float32, -bound, bound)
        b = jax.random.uniform(k_b, (1, fan_out), jnp.float32, -bound, bound)
        return w, b

    k1, k2, k3 = jax.random.split(key, 3)
    w1, b1 = linear(k1, obs_dim + ctx_len, 128)
    w2, b2 = linear(k2, 128, 64)
    w3, b3 = linear(k3, 64, action_dim)
    return (w1, b1, w2, b2, w3, b3)


if __name__ == "__main__":
    # Small shapes consistent with the module's forward: x is (batch, obs_dim)
    batch, obs_dim, ctx_len, action_dim = 8, 16, 4, 6

    key = jax.random.PRNGKey(0)
    k_x, k_ctx, k_params = jax.random.split(key, 3)

    x = jax.random.normal(k_x, (batch, obs_dim), jnp.float32)
    context = jax.random.normal(k_ctx, (ctx_len,), jnp.float32)
    params = init_actor_params(k_params, obs_dim, ctx_len, action_dim)
    kparams, adim = prepare_actor_params(params, context)

    # single-grid-step path (batch <= tile)
    probs = actor_forward(x, kparams, adim)
    jax.block_until_ready(probs)
    assert probs.shape == (batch, action_dim)
    # exact reciprocal -> rows normalized to f32 precision
    assert bool(jnp.allclose(jnp.sum(probs, axis=-1), 1.0, atol=1e-3))
    ref = actor_forward_ref(x, context, params)
    # bf16 MXU inputs vs f32 reference
    assert bool(jnp.allclose(probs, ref, rtol=5e-3, atol=5e-3))

    # tiled grid path: batch > tile, not a multiple of the tile (partial block)
    big_batch = 200
    xb = jax.random.normal(jax.random.PRNGKey(1), (big_batch, obs_dim), jnp.float32)
    probs_b = actor_forward(xb, kparams, adim, tb=64)
    jax.block_until_ready(probs_b)
    assert probs_b.shape == (big_batch, action_dim)
    assert bool(jnp.allclose(jnp.sum(probs_b, axis=-1), 1.0, atol=1e-3))
    ref_b = actor_forward_ref(xb, context, params)
    assert bool(jnp.allclose(probs_b, ref_b, rtol=5e-3, atol=5e-3))

    print("KERNEL_OK")
</pallas_src>

<mosaic_0001>
module attributes {stable_mosaic.version = 11 : i64} {
  func.func @actor_kernel(%arg0: i32, %arg1: memref<8x16xf32, #tpu.memory_space<vmem>>, %arg2: memref<16x128xbf16, #tpu.memory_space<vmem>>, %arg3: memref<1x128xf32, #tpu.memory_space<vmem>>, %arg4: memref<128x64xbf16, #tpu.memory_space<vmem>>, %arg5: memref<1x64xf32, #tpu.memory_space<vmem>>, %arg6: memref<64x128xbf16, #tpu.memory_space<vmem>>, %arg7: memref<1x128xf32, #tpu.memory_space<vmem>>, %arg8: memref<8x6xf32, #tpu.memory_space<vmem>>) attributes {dimension_semantics = [#tpu.dimension_semantics<parallel>], iteration_bounds = array<i64: 1>, scalar_prefetch = 0 : i64, scratch_operands = 0 : i64, tpu.core_type = #tpu.core_type<tc>, window_params = [{transform_indices = @transform_0, window_bounds = array<i64: 8, 16>}, {pipeline_mode = #tpu.pipeline_mode<synchronous>, transform_indices = @transform_1, window_bounds = array<i64: 16, 128>}, {pipeline_mode = #tpu.pipeline_mode<synchronous>, transform_indices = @transform_2, window_bounds = array<i64: 1, 128>}, {pipeline_mode = #tpu.pipeline_mode<synchronous>, transform_indices = @transform_3, window_bounds = array<i64: 128, 64>}, {pipeline_mode = #tpu.pipeline_mode<synchronous>, transform_indices = @transform_4, window_bounds = array<i64: 1, 64>}, {pipeline_mode = #tpu.pipeline_mode<synchronous>, transform_indices = @transform_5, window_bounds = array<i64: 64, 128>}, {pipeline_mode = #tpu.pipeline_mode<synchronous>, transform_indices = @transform_6, window_bounds = array<i64: 1, 128>}, {transform_indices = @transform_7, window_bounds = array<i64: 8, 6>}]} {
    %c0 = arith.constant 0 : index
    %c0_0 = arith.constant 0 : index
    %0 = vector.load %arg1[%c0, %c0_0] : memref<8x16xf32, #tpu.memory_space<vmem>>, vector<8x16xf32>
    %1 = arith.truncf %0 : vector<8x16xf32> to vector<8x16xbf16>
    %c0_1 = arith.constant 0 : index
    %c0_2 = arith.constant 0 : index
    %2 = vector.load %arg2[%c0_1, %c0_2] : memref<16x128xbf16, #tpu.memory_space<vmem>>, vector<16x128xbf16>
    %cst = arith.constant dense<0.000000e+00> : vector<8x128xf32>
    %3 = tpu.matmul %1, %2, %cst {dimension_numbers = #tpu.dot_dimension_numbers<[1], [0], [0], [1], [0, 0, 1, 1], [], []>} : vector<8x16xbf16>, vector<16x128xbf16>, vector<8x128xf32> -> vector<8x128xf32>
    %c0_3 = arith.constant 0 : index
    %c0_4 = arith.constant 0 : index
    %4 = vector.load %arg3[%c0_3, %c0_4] : memref<1x128xf32, #tpu.memory_space<vmem>>, vector<1x128xf32>
    %5 = vector.broadcast %4 : vector<1x128xf32> to vector<8x128xf32>
    %6 = arith.addf %3, %5 : vector<8x128xf32>
    %cst_5 = arith.constant 0.000000e+00 : f32
    %7 = vector.broadcast %cst_5 : f32 to vector<8x128xf32>
    %8 = arith.maximumf %6, %7 : vector<8x128xf32>
    %9 = arith.truncf %8 : vector<8x128xf32> to vector<8x128xbf16>
    %c0_6 = arith.constant 0 : index
    %c0_7 = arith.constant 0 : index
    %10 = vector.load %arg4[%c0_6, %c0_7] : memref<128x64xbf16, #tpu.memory_space<vmem>>, vector<128x64xbf16>
    %cst_8 = arith.constant dense<0.000000e+00> : vector<8x64xf32>
    %11 = tpu.matmul %9, %10, %cst_8 {dimension_numbers = #tpu.dot_dimension_numbers<[1], [0], [0], [1], [0, 0, 1, 1], [], []>} : vector<8x128xbf16>, vector<128x64xbf16>, vector<8x64xf32> -> vector<8x64xf32>
    %c0_9 = arith.constant 0 : index
    %c0_10 = arith.constant 0 : index
    %12 = vector.load %arg5[%c0_9, %c0_10] : memref<1x64xf32, #tpu.memory_space<vmem>>, vector<1x64xf32>
    %13 = vector.broadcast %12 : vector<1x64xf32> to vector<8x64xf32>
    %14 = arith.addf %11, %13 : vector<8x64xf32>
    %cst_11 = arith.constant 0.000000e+00 : f32
    %15 = vector.broadcast %cst_11 : f32 to vector<8x64xf32>
    %16 = arith.maximumf %14, %15 : vector<8x64xf32>
    %17 = arith.truncf %16 : vector<8x64xf32> to vector<8x64xbf16>
    %c0_12 = arith.constant 0 : index
    %c0_13 = arith.constant 0 : index
    %18 = vector.load %arg6[%c0_12, %c0_13] : memref<64x128xbf16, #tpu.memory_space<vmem>>, vector<64x128xbf16>
    %cst_14 = arith.constant dense<0.000000e+00> : vector<8x128xf32>
    %19 = tpu.matmul %17, %18, %cst_14 {dimension_numbers = #tpu.dot_dimension_numbers<[1], [0], [0], [1], [0, 0, 1, 1], [], []>} : vector<8x64xbf16>, vector<64x128xbf16>, vector<8x128xf32> -> vector<8x128xf32>
    %c0_15 = arith.constant 0 : index
    %c0_16 = arith.constant 0 : index
    %20 = vector.load %arg7[%c0_15, %c0_16] : memref<1x128xf32, #tpu.memory_space<vmem>>, vector<1x128xf32>
    %21 = vector.broadcast %20 : vector<1x128xf32> to vector<8x128xf32>
    %22 = arith.addf %19, %21 : vector<8x128xf32>
    %cst_17 = arith.constant dense<0xFF800000> : vector<8xf32>
    %23 = vector.multi_reduction <maximumf>, %22, %cst_17 [1] : vector<8x128xf32> to vector<8xf32>
    %24 = vector.shape_cast %23 : vector<8xf32> to vector<8x1xf32>
    %25 = vector.broadcast %24 : vector<8x1xf32> to vector<8x128xf32>
    %26 = arith.subf %22, %25 : vector<8x128xf32>
    %27 = math.exp %26 : vector<8x128xf32>
    %cst_18 = arith.constant dense<0.000000e+00> : vector<8xf32>
    %28 = vector.multi_reduction <add>, %27, %cst_18 [1] : vector<8x128xf32> to vector<8xf32>
    %29 = vector.shape_cast %28 : vector<8xf32> to vector<8x1xf32>
    %30 = tpu.reciprocal %29 : vector<8x1xf32> -> vector<8x1xf32>
    %31 = vector.broadcast %30 : vector<8x1xf32> to vector<8x128xf32>
    %32 = arith.mulf %27, %31 : vector<8x128xf32>
    %33 = vector.extract_strided_slice %32 {offsets = [0, 0], sizes = [8, 6], strides = [1, 1]} : vector<8x128xf32> to vector<8x6xf32>
    %c0_19 = arith.constant 0 : index
    %c0_20 = arith.constant 0 : index
    %34 = vector.load %arg8[%c0_19, %c0_20] : memref<8x6xf32, #tpu.memory_space<vmem>>, vector<8x6xf32>
    tpu.vector_store %arg8[%c0_19, %c0_20], %33 {strides = array<i32>} : memref<8x6xf32, #tpu.memory_space<vmem>>, vector<8x6xf32>,
    return
  }
  func.func @transform_0(%arg0: i32) -> (i32, i32) {
    %c0_i32 = arith.constant 0 : i32
    %c0_i32_0 = arith.constant 0 : i32
    return %arg0, %c0_i32 : i32, i32
  }
  func.func @transform_1(%arg0: i32) -> (i32, i32) {
    %c0_i32 = arith.constant 0 : i32
    %c0_i32_0 = arith.constant 0 : i32
    %c0_i32_1 = arith.constant 0 : i32
    return %c0_i32, %c0_i32_0 : i32, i32
  }
  func.func @transform_2(%arg0: i32) -> (i32, i32) {
    %c0_i32 = arith.constant 0 : i32
    %c0_i32_0 = arith.constant 0 : i32
    %c0_i32_1 = arith.constant 0 : i32
    return %c0_i32, %c0_i32_0 : i32, i32
  }
  func.func @transform_3(%arg0: i32) -> (i32, i32) {
    %c0_i32 = arith.constant 0 : i32
    %c0_i32_0 = arith.constant 0 : i32
    %c0_i32_1 = arith.constant 0 : i32
    return %c0_i32, %c0_i32_0 : i32, i32
  }
  func.func @transform_4(%arg0: i32) -> (i32, i32) {
    %c0_i32 = arith.constant 0 : i32
    %c0_i32_0 = arith.constant 0 : i32
    %c0_i32_1 = arith.constant 0 : i32
    return %c0_i32, %c0_i32_0 : i32, i32
  }
  func.func @transform_5(%arg0: i32) -> (i32, i32) {
    %c0_i32 = arith.constant 0 : i32
    %c0_i32_0 = arith.constant 0 : i32
    %c0_i32_1 = arith.constant 0 : i32
    return %c0_i32, %c0_i32_0 : i32, i32
  }
  func.func @transform_6(%arg0: i32) -> (i32, i32) {
    %c0_i32 = arith.constant 0 : i32
    %c0_i32_0 = arith.constant 0 : i32
    %c0_i32_1 = arith.constant 0 : i32
    return %c0_i32, %c0_i32_0 : i32, i32
  }
  func.func @transform_7(%arg0: i32) -> (i32, i32) {
    %c0_i32 = arith.constant 0 : i32
    %c0_i32_0 = arith.constant 0 : i32
    return %arg0, %c0_i32 : i32, i32
  }
}

</mosaic_0001>

<bundles_post_ra>
// kernel: tpu_custom_call.1
= control target key start
LH: loop header
LB: loop body
LE: loop exit
PB: predicated region body
PF: predicated region fallthrough
CT: control target
= control target key end

     0   :  { %v428_v1 = vmov 0.0   ;;  %vm45_vm0 = vcmask 130048   ;;  %vm429_vm1 = vmmov 0   ;;  %s534_s0 = inlined_call_operand.vmem [shape: f32[8,16], index: 0, kind: input, shape index: {}]   ;;  %s535_s1 = inlined_call_operand.vmem [shape: bf16[16,128], index: 1, kind: input, shape index: {}]   ;;  %s536_s2 = inlined_call_operand.vmem [shape: f32[1,128], index: 2, kind: input, shape index: {}]   ;;  %s537_s3 = inlined_call_operand.vmem [shape: bf16[128,64], index: 3, kind: input, shape index: {}]   ;;  %s538_s4 = inlined_call_operand.vmem [shape: f32[1,64], index: 4, kind: input, shape index: {}]   ;;  %s539_s5 = inlined_call_operand.vmem [shape: bf16[64,128], index: 5, kind: input, shape index: {}]   ;;  %s540_s6 = inlined_call_operand.vmem [shape: f32[1,128], index: 6, kind: input, shape index: {}]   ;;  %s541_s7 = inlined_call_operand.hbm [shape: f32[8,6], index: 7, kind: output, shape index: {}]  }
   0x1   :  { %v387_v0 = vld [vmem:[%s535_s1] sm:$0xff]   ;;  %346 = vmatprep.subr.bf16.mxu0 %v428_v1  ;;  %352 = vmatprep.subr.bf16.mxu1 %v428_v1  ;;  %v389_v5 = vld [vmem:[%s537_s3 + $0x8] sm:$0xff]   ;;  %v390_v6 = vld [vmem:[%s537_s3 + $0x10] sm:$0xff]  }
   0x2   :  { %v28_v2 = vld [vmem:[%s534_s0] sm:$0xff]  ;;  %347 = vmatpush3.bf16.msra.mxu0 %v387_v0  ;;  %348 = vmatprep.mubr.msk.bf16.mxu0 %vm429_vm1, %v428_v1  ;;  %v391_v7 = vld [vmem:[%s537_s3 + $0x18] sm:$0xff]  }
   0x3   :  { %v388_v3 = vld [vmem:[%s537_s3] sm:$0xff]   ;;  %v29_v4 = vpack.c.bf16 %v28_v2, %v28_v2  ;;  %368 = vmatprep.mubr.msk.bf16.mxu1 %vm429_vm1, %v428_v1  ;;  %372 = vmatprep.subr.bf16.mxu0 %v428_v1 }
   0x4   :  { %353 = vmatpush3.bf16.msra.mxu1 %v388_v3 }
   0x5   :  { %354 = vmatprep.subr.bf16.mxu1 %v428_v1  ;;  %349 = vmatmul.mubr.msk.bf16.vlgmr.msra.gmra.mrb[0].mxu0 %vm45_vm0, %v29_v4 }
   0x6   :  { %380 = vmatprep.mubr.msk.bf16.mxu0 %vm429_vm1, %v428_v1 }
   0x8   :  { %355 = vmatpush3.bf16.msra.mxu1 %v389_v5 }
   0x9   :  { %356 = vmatprep.subr.bf16.mxu1 %v428_v1 }
   0xc   :  { %357 = vmatpush3.bf16.msra.mxu1 %v390_v6 }
   0xd   :  { %12 = vsyncpa [#allocation3], 0  ;;  %358 = vmatprep.subr.bf16.mxu1 %v428_v1  ;;  %v392_v8 = vld [vmem:[%s537_s3 + $0x20] sm:$0xff]   ;;  %v393_v9 = vld [vmem:[%s537_s3 + $0x28] sm:$0xff]   ;;  %vm243_vm2 = vcmask 523264   ;;  %vm296_vm3 = vcmask 48128  }
   0xe   :  { %v394_v10 = vld [vmem:[%s537_s3 + $0x30] sm:$0xff]   ;;  %v395_v11 = vld [vmem:[%s537_s3 + $0x38] sm:$0xff]   ;;  %v396_v12 = vld [vmem:[%s539_s5] sm:$0xff]  }
   0xf   :  { %373 = vmatpush3.bf16.msra.mxu0 %v396_v12  ;;  %v397_v13 = vld [vmem:[%s539_s5 + $0x8] sm:$0xff]   ;;  %v312_v14 = vld [vmem:[%s536_s2] ss:$0 sm:$0xff]  ;;  %v398_v22 = vld [vmem:[%s539_s5 + $0x10] sm:$0xff]  }
  0x10   :  { %359 = vmatpush3.bf16.msra.mxu1 %v391_v7  ;;  %374 = vmatprep.subr.bf16.mxu0 %v428_v1  ;;  %v399_v23 = vld [vmem:[%s539_s5 + $0x18] sm:$0xff]   ;;  %v315_v24 = vld [vmem:[%s538_s4] ss:$0 sm:$0xff]  ;;  %s430_s4 = smov [#allocation2]  }
  0x11   :  { %360 = vmatprep.subr.bf16.mxu1 %v428_v1  ;;  %v324_v32 = vld [vmem:[%s540_s6] ss:$0 sm:$0xff]  ;;  %s304_s5 = sshll.u32 %s430_s4, 4  ;;  %s305_s5 = int_to_ptr.vmem [resolvable:$true] %s304_s5 }
  0x12   :  { %s404_s6 = scalar_lea.vmem %s305_s5, 128  ;;  %p409_p1 = scmp.lt.s32.totalorder %s305_s5, %s305_s5 }
  0x13   :  { %375 = vmatpush3.bf16.msra.mxu0 %v397_v13  ;;  %p405_p0 = scmp.ne.s32.totalorder %s305_s5, %s404_s6  ;;  %p410_p2 = scmp.lt.s32.totalorder %s404_s6, %s404_s6 }
  0x14   :  { %361 = vmatpush3.bf16.msra.mxu1 %v392_v8  ;;  %376 = vmatprep.subr.bf16.mxu0 %v428_v1 }
  0x15   :  { %362 = vmatprep.subr.bf16.mxu1 %v428_v1  ;;  %p411_p3 = por %p410_p2, %p409_p1 }
  0x17   :  { %377 = vmatpush3.bf16.msra.mxu0 %v398_v22  ;;  %p412_p4 = pnand %p411_p3, %p405_p0 }
  0x18   :  { %363 = vmatpush3.bf16.msra.mxu1 %v393_v9  ;;  %378 = vmatprep.subr.bf16.mxu0 %v428_v1 }
  0x19   :  { %364 = vmatprep.subr.bf16.mxu1 %v428_v1 }
  0x1b   :  { %379 = vmatpush3.bf16.msra.mxu0 %v399_v23 }
  0x1c   :  { %365 = vmatpush3.bf16.msra.mxu1 %v394_v10 }
  0x1d   :  { %366 = vmatprep.subr.bf16.mxu1 %v428_v1 }
  0x20   :  { %367 = vmatpush3.bf16.msra.mxu1 %v395_v11 }
  0xd8   :  { %v83_v15 = vpop.f32.mrb[0].mxu0 }
  0xd9   :  { %v84_v16 = vadd.f32 %v312_v14, %v83_v15  ;;  %v350_v17 = vpop.f32.mrb[1].mxu0 }
  0xda   :  { %v86_v18 = vpop.f32.mrb[2].mxu0 }
  0xdb   :  { %v89_v19 = vmax.f32 %v84_v16, 0.0  ;;  %v351_v20 = vpop.f32.mrb[3].mxu0 }
  0xdd   :  { %v90_v21 = vpack.c.bf16 %v89_v19, %v89_v19 }
  0xdf   :  { %369 = vmatmul.mubr.bf16.vlgmr.msra.gmra.mrb[0].mxu1 %v90_v21 }
 0x1b2   :  { %v196_v25 = vpop.f32.mrb[0].mxu1 }
 0x1b3   :  { %v197_v26 = vadd.f32 %v315_v24, %v196_v25  ;;  %v370_v27 = vpop.f32.mrb[1].mxu1 }
 0x1b4   :  { %v199_v28 = vpop.f32.mrb[2].mxu1 }
 0x1b5   :  { %v202_v29 = vmax.f32 %v197_v26, 0.0  ;;  %v371_v30 = vpop.f32.mrb[3].mxu1 }
 0x1b7   :  { %v203_v31 = vpack.c.bf16 %v202_v29, %v202_v29 }
 0x1b9   :  { %381 = vmatmul.mubr.msk.bf16.vlgmr.msra.gmra.mrb[4].mxu0 %vm243_vm2, %v203_v31 }
 0x28c   :  { %v281_v33 = vpop.f32.mrb[4].mxu0 }
 0x28d   :  { %v282_v34 = vadd.f32 %v324_v32, %v281_v33  ;;  %v382_v35 = vpop.f32.mrb[5].mxu0 }
 0x28e   :  { %v284_v36 = vpop.f32.mrb[6].mxu0 }
 0x28f   :  { %287 = vmax.xlane.f32.xlu0 %v282_v34  ;;  %v383_v37 = vpop.f32.mrb[7].mxu0 }
 0x31c   :  { %v288_v38 = vpop.xlane.xlu0 %287 }
 0x31d   :  { %v289_v39 = vsub.f32 %v282_v34, %v288_v38 }
 0x31f   :  { %v290_v40 = vmul.f32 1.442695, %v289_v39 }
 0x321   :  { %400 = vpow2.f32 %v290_v40 }
 0x32b   :  { %v401_v41 = vpop.eup %400 }
 0x32c   :  { %292 = vadd.xlane.f32.xlu0 %v401_v41 }
 0x3b9   :  { %v293_v42 = vpop.xlane.xlu0 %292 }
 0x3ba   :  { %402 = vrcp.f32 %v293_v42 }
 0x3c4   :  { %v403_v43 = vpop.eup %402 }
 0x3c5   :  { %v295_v44 = vmul.f32 %v403_v43, %v401_v41 }
 0x3c7   :  { %297 = vst.msk [vmem:[#allocation2] sm:$0xff] %vm296_vm3, %v295_v44 }
 0x3c8   :  { %415 = shalt.err (!%p412_p4)
}
 0x3c9   :  { %s416_s1 = scalar_lea.hbm %s541_s7, 128 }
 0x3ca   :  { %p417_p5 = scmp.ne.s32.totalorder %s541_s7, %s416_s1  ;;  %p420_p6 = scmp.lt.u32.totalorder %s416_s1, %s541_s7 }
 0x3cc   :  { %p422_p7 = pnand %p420_p6, %p417_p5 }
 0x3ce   :  { %425 = shalt.err (!%p422_p7)
}
 0x3cf   :  { %307 = dma.vmem_to_hbm [thread:$0]  %s305_s5, 128, %s541_s7, [#allocation3]  }
 0x3d0   :  { %426 = dma.done.wait [#allocation3], 128  }
 0x3d1   :  { %427 = vsyncadd [#allocation3], 4294967168 }
 0x3d2   :  { %311 = vsyncpa [#allocation3], 1 }

</bundles_post_ra>
